<compile_context>
chip_gen: v7x
topology: tpu7x:2x2x1
jax: 0.10.0
libtpu: 0.0.40
codegen_flags: <defaults>
</compile_context>

<pallas_src>
import functools

import jax
import jax.numpy as jnp
from jax.experimental import pallas as pl
from jax.experimental.pallas import tpu as pltpu

EPS = 1e-6
LANE = 128


def _feature_kernel(x_ref, out_ref, *, inv_scale: float):
    """Outlier clip (mean±4σ) + standard scaling for one (T, W) column block.

    Uses centered two-pass moments for numerical stability.  The mean shift
    cancels algebraically between the two stages, so the clipped data is kept
    centered:  clip(X, m0-4s, m0+4s) - mean(clip(...)) ==
               clip(X-m0, -4s, 4s) - mean(clip(X-m0, ...)).
    Zero (padding) columns scale to exactly 0.  Columns of the ragged last
    block that lie outside the output array are dropped by the masked store,
    so garbage read there never escapes (stats are purely per-column).
    """
    X = x_ref[...].astype(jnp.float32)                      # (T, W)
    inv_n = 1.0 / float(X.shape[0])

    # stage 1: outlier removal (per-feature clip to mean +/- 4*std, ddof=0)
    mean0 = jnp.sum(X, axis=0, keepdims=True) * inv_n
    d = X - mean0
    var0 = jnp.sum(d * d, axis=0, keepdims=True) * inv_n
    lim = 4.0 * jnp.sqrt(var0)
    dc = jnp.clip(d, -lim, lim)

    # stage 2: standard scaling of the clipped data (per feature, ddof=0)
    m1 = jnp.sum(dc, axis=0, keepdims=True) * inv_n
    e = dc - m1
    var1 = jnp.sum(e * e, axis=0, keepdims=True) * inv_n

    # exact reciprocal on a (1, W) vector; scale_by_max_features folded in.
    inv_std = inv_scale / (jnp.sqrt(var1) + EPS)
    out_ref[...] = (e * inv_std).astype(out_ref.dtype)


class RegressionToSurvival:
    """JAX/Pallas port of the PyTorch RegressionToSurvival module."""

    def __init__(self, hp: dict, censoring_rate: float = 0.3,
                 out_dtype=jnp.float32):
        self.hp = hp
        # np.random.uniform(0.1, 0.5) in the original; fixed here for determinism.
        self.censoring_rate = float(censoring_rate)
        # PyTorch module returns .float(); downstream consumers wanting bf16
        # activations can pass out_dtype=jnp.bfloat16 to halve output traffic.
        self.out_dtype = out_dtype

    def __call__(self, X: jnp.ndarray, y: jnp.ndarray, key: jax.Array):
        if X.ndim != 2 or y.ndim != 1 or X.shape[0] != y.shape[0]:
            raise ValueError(f"Input shapes mismatch. X: {X.shape}, y: {y.shape}")

        T, H = X.shape
        max_features = int(self.hp["max_features"])
        if H > max_features:
            raise ValueError(f"num_features ({H}) exceeds max_features ({max_features})")

        key_perm, key_noise = jax.random.split(key)

        # ---------------- feature path ----------------
        permute = bool(self.hp.get("permute_features", True))
        if permute or H < max_features:
            # Fuse column permutation + zero-pad to max_features into a single
            # gather, keeping the original dtype (kernel casts to f32).
            if permute:
                perm = jax.random.permutation(key_perm, H).astype(jnp.int32)
            else:
                perm = jnp.arange(H, dtype=jnp.int32)
            idx = jnp.concatenate(
                [perm, jnp.full((max_features - H,), H, dtype=jnp.int32)])
            Xin = jnp.take(X, idx, axis=1, mode="fill", fill_value=0)
        else:
            Xin = X  # H == max_features, no permutation: no extra HBM passes

        inv_scale = (float(max_features) / float(H)
                     if self.hp.get("scale_by_max_features", False) else 1.0)

        # 128-wide column blocks (kept at 128 so v7x megacore can shard the
        # grid when there are >= 2 blocks); ragged last block handled by
        # Pallas masked stores, so no lane padding of the arrays is needed.
        block_w = LANE if max_features >= LANE else max_features
        n_blocks = pl.cdiv(max_features, block_w)

        # VMEM budget from the live buffers (2x in + 2x out double buffers +
        # ~2 live (T, W) f32 temps), capped at ~75% of physical VMEM.
        in_bytes = T * block_w * Xin.dtype.itemsize
        out_bytes = T * block_w * jnp.dtype(self.out_dtype).itemsize
        need = 2 * in_bytes + 2 * out_bytes + 2 * T * block_w * 4 + (1 << 20)
        try:
            vmem_cap = int(pltpu.get_tpu_info().vmem_capacity_bytes)
        except Exception:
            vmem_cap = 64 * 1024 * 1024  # conservative fallback (v7x per-TC)
        vmem_limit = min(max(need, 32 * 1024 * 1024), int(0.75 * vmem_cap))
        # TODO(synk): when `need` exceeds ~75% of VMEM (very large T,
        # especially on v7x's 64 MiB), add a row-tiled multi-pass variant
        # (grid=(cols, rows), sum/sumsq VMEM scratch accumulators, finalize
        # under pl.when(last_row_block)).  v6e could also widen blocks to
        # (T, 256/512) for fewer grid steps when T is moderate.

        cost = pl.CostEstimate(
            flops=12 * T * max_features,
            transcendentals=2 * max_features,
            bytes_accessed=T * max_features * (Xin.dtype.itemsize
                                               + jnp.dtype(self.out_dtype).itemsize),
        )

        x_out = pl.pallas_call(
            functools.partial(_feature_kernel, inv_scale=inv_scale),
            out_shape=jax.ShapeDtypeStruct((T, max_features), self.out_dtype),
            grid=(n_blocks,),
            in_specs=[pl.BlockSpec((T, block_w), lambda j: (0, j))],
            out_specs=pl.BlockSpec((T, block_w), lambda j: (0, j)),
            compiler_params=pltpu.CompilerParams(
                dimension_semantics=("parallel",),
                vmem_limit_bytes=vmem_limit,
            ),
            cost_estimate=cost,
        )(Xin)

        # ---------------- survival path ----------------
        # After the quantile/std scalars this is purely elementwise; XLA fuses
        # it into a single pass, so no second pallas_call (per perf review).
        yf = y.astype(jnp.float32)
        my = jnp.mean(yf)
        sy = jnp.sqrt(jnp.mean((yf - my) ** 2))
        ys = (yf - my) / (sy + EPS)                       # standardized true time
        q = jnp.quantile(ys, 1.0 - self.censoring_rate)   # sort stays in XLA glue
        std_u = jnp.std(ys, ddof=1)                       # torch.std default ddof=1
        noise = jax.random.normal(key_noise, (T,), dtype=jnp.float32)
        cens = q + noise * (2.0 * std_u)
        event = (ys <= cens).astype(jnp.float32)
        obs_time = jnp.minimum(ys, cens)

        return x_out, (event, obs_time)


def _reference(Xp, y, noise, censoring_rate, hp):
    """Pure-JAX mirror of the PyTorch module (same permutation / noise)."""
    max_features = int(hp["max_features"])
    H = Xp.shape[1]
    mean0 = jnp.mean(Xp, axis=0, keepdims=True)
    std0 = jnp.sqrt(jnp.mean((Xp - mean0) ** 2, axis=0, keepdims=True))
    Xc = jnp.clip(Xp, mean0 - 4 * std0, mean0 + 4 * std0)
    mean1 = jnp.mean(Xc, axis=0, keepdims=True)
    std1 = jnp.sqrt(jnp.mean((Xc - mean1) ** 2, axis=0, keepdims=True))
    Xs = (Xc - mean1) / (std1 + EPS)
    if hp.get("scale_by_max_features", False):
        Xs = Xs / (H / max_features)
    Xs = jnp.pad(Xs, ((0, 0), (0, max_features - H)))

    my = jnp.mean(y)
    sy = jnp.sqrt(jnp.mean((y - my) ** 2))
    ys = (y - my) / (sy + EPS)
    q = jnp.quantile(ys, 1.0 - censoring_rate)
    std_u = jnp.std(ys, ddof=1)
    cens = q + noise * (2.0 * std_u)
    event = (ys <= cens).astype(jnp.float32)
    obs = jnp.minimum(ys, cens)
    return Xs, event, obs


def _run_case(name, hp, T, H, key, censoring_rate=0.3):
    module = RegressionToSurvival(hp, censoring_rate=censoring_rate)
    kx, ky, kcall = jax.random.split(key, 3)
    X = jax.random.normal(kx, (T, H), dtype=jnp.float32) * 2.0 + 1.0
    y = jax.random.normal(ky, (T,), dtype=jnp.float32) * 3.0

    x_out, (event, obs_time) = module(X, y, kcall)
    jax.block_until_ready((x_out, event, obs_time))

    # reproduce the module's permutation / noise draws for the reference
    key_perm, key_noise = jax.random.split(kcall)
    if hp.get("permute_features", True):
        perm = jax.random.permutation(key_perm, H)
    else:
        perm = jnp.arange(H)
    noise = jax.random.normal(key_noise, (T,), dtype=jnp.float32)
    Xs_ref, event_ref, obs_ref = _reference(
        X[:, perm].astype(jnp.float32), y.astype(jnp.float32),
        noise, censoring_rate, hp)

    assert x_out.shape == (T, hp["max_features"]), name
    xerr = float(jnp.max(jnp.abs(x_out.astype(jnp.float32) - Xs_ref)))
    assert jnp.allclose(x_out.astype(jnp.float32), Xs_ref,
                        atol=2e-4, rtol=2e-4), (name, xerr)
    assert jnp.allclose(event, event_ref, atol=1e-6), name
    assert jnp.allclose(obs_time, obs_ref, atol=1e-5, rtol=1e-5), name


if __name__ == "__main__":
    key = jax.random.PRNGKey(0)
    k1, k2 = jax.random.split(key)

    # small case: single (T, max_features) block, max_features < 128
    _run_case(
        "small",
        {"max_features": 8, "permute_features": True, "scale_by_max_features": False},
        T=16, H=4, key=k1)

    # ragged case: two 128-wide column blocks, max_features % 128 != 0,
    # scale_by_max_features folded into the in-kernel reciprocal
    _run_case(
        "ragged",
        {"max_features": 200, "permute_features": True, "scale_by_max_features": True},
        T=64, H=100, key=k2)

    print("KERNEL_OK")
</pallas_src>

<mosaic_0001>
module attributes {stable_mosaic.version = 11 : i64} {
  func.func @_feature_kernel(%arg0: i32, %arg1: memref<16x8xf32, #tpu.memory_space<vmem>>, %arg2: memref<16x8xf32, #tpu.memory_space<vmem>>) attributes {dimension_semantics = [#tpu.dimension_semantics<parallel>], iteration_bounds = array<i64: 1>, scalar_prefetch = 0 : i64, scratch_operands = 0 : i64, tpu.core_type = #tpu.core_type<tc>, window_params = [{transform_indices = @transform_0, window_bounds = array<i64: 16, 8>}, {transform_indices = @transform_1, window_bounds = array<i64: 16, 8>}]} {
    %c0 = arith.constant 0 : index
    %c0_0 = arith.constant 0 : index
    %0 = vector.load %arg1[%c0, %c0_0] : memref<16x8xf32, #tpu.memory_space<vmem>>, vector<16x8xf32>
    %cst = arith.constant dense<0.000000e+00> : vector<8xf32>
    %1 = vector.multi_reduction <add>, %0, %cst [0] : vector<16x8xf32> to vector<8xf32>
    %2 = vector.shape_cast %1 : vector<8xf32> to vector<1x8xf32>
    %cst_1 = arith.constant 6.250000e-02 : f32
    %3 = vector.broadcast %cst_1 : f32 to vector<1x8xf32>
    %4 = arith.mulf %2, %3 : vector<1x8xf32>
    %5 = vector.broadcast %4 : vector<1x8xf32> to vector<16x8xf32>
    %6 = arith.subf %0, %5 : vector<16x8xf32>
    %7 = arith.mulf %6, %6 : vector<16x8xf32>
    %cst_2 = arith.constant dense<0.000000e+00> : vector<8xf32>
    %8 = vector.multi_reduction <add>, %7, %cst_2 [0] : vector<16x8xf32> to vector<8xf32>
    %9 = vector.shape_cast %8 : vector<8xf32> to vector<1x8xf32>
    %cst_3 = arith.constant 6.250000e-02 : f32
    %10 = vector.broadcast %cst_3 : f32 to vector<1x8xf32>
    %11 = arith.mulf %9, %10 : vector<1x8xf32>
    %12 = math.sqrt %11 : vector<1x8xf32>
    %cst_4 = arith.constant 4.000000e+00 : f32
    %13 = vector.broadcast %cst_4 : f32 to vector<1x8xf32>
    %14 = arith.mulf %13, %12 : vector<1x8xf32>
    %cst_5 = arith.constant 0.000000e+00 : f32
    %15 = vector.broadcast %cst_5 : f32 to vector<1x8xf32>
    %16 = arith.subf %15, %14 : vector<1x8xf32>
    %17 = vector.broadcast %16 : vector<1x8xf32> to vector<16x8xf32>
    %18 = arith.maximumf %17, %6 : vector<16x8xf32>
    %19 = vector.broadcast %14 : vector<1x8xf32> to vector<16x8xf32>
    %20 = arith.minimumf %19, %18 : vector<16x8xf32>
    %cst_6 = arith.constant dense<0.000000e+00> : vector<8xf32>
    %21 = vector.multi_reduction <add>, %20, %cst_6 [0] : vector<16x8xf32> to vector<8xf32>
    %22 = vector.shape_cast %21 : vector<8xf32> to vector<1x8xf32>
    %cst_7 = arith.constant 6.250000e-02 : f32
    %23 = vector.broadcast %cst_7 : f32 to vector<1x8xf32>
    %24 = arith.mulf %22, %23 : vector<1x8xf32>
    %25 = vector.broadcast %24 : vector<1x8xf32> to vector<16x8xf32>
    %26 = arith.subf %20, %25 : vector<16x8xf32>
    %27 = arith.mulf %26, %26 : vector<16x8xf32>
    %cst_8 = arith.constant dense<0.000000e+00> : vector<8xf32>
    %28 = vector.multi_reduction <add>, %27, %cst_8 [0] : vector<16x8xf32> to vector<8xf32>
    %29 = vector.shape_cast %28 : vector<8xf32> to vector<1x8xf32>
    %cst_9 = arith.constant 6.250000e-02 : f32
    %30 = vector.broadcast %cst_9 : f32 to vector<1x8xf32>
    %31 = arith.mulf %29, %30 : vector<1x8xf32>
    %32 = math.sqrt %31 : vector<1x8xf32>
    %cst_10 = arith.constant 9.99999997E-7 : f32
    %33 = vector.broadcast %cst_10 : f32 to vector<1x8xf32>
    %34 = arith.addf %32, %33 : vector<1x8xf32>
    %cst_11 = arith.constant 1.000000e+00 : f32
    %35 = vector.broadcast %cst_11 : f32 to vector<1x8xf32>
    %36 = arith.divf %35, %34 : vector<1x8xf32>
    %37 = vector.broadcast %36 : vector<1x8xf32> to vector<16x8xf32>
    %38 = arith.mulf %26, %37 : vector<16x8xf32>
    %c0_12 = arith.constant 0 : index
    %c0_13 = arith.constant 0 : index
    %39 = vector.load %arg2[%c0_12, %c0_13] : memref<16x8xf32, #tpu.memory_space<vmem>>, vector<16x8xf32>
    tpu.vector_store %arg2[%c0_12, %c0_13], %38 {strides = array<i32>} : memref<16x8xf32, #tpu.memory_space<vmem>>, vector<16x8xf32>,
    return
  }
  func.func @transform_0(%arg0: i32) -> (i32, i32) {
    %c0_i32 = arith.constant 0 : i32
    %c0_i32_0 = arith.constant 0 : i32
    return %c0_i32, %arg0 : i32, i32
  }
  func.func @transform_1(%arg0: i32) -> (i32, i32) {
    %c0_i32 = arith.constant 0 : i32
    %c0_i32_0 = arith.constant 0 : i32
    return %c0_i32, %arg0 : i32, i32
  }
}

</mosaic_0001>

<bundles_post_ra>
// kernel: tpu_custom_call.1
= control target key start
LH: loop header
LB: loop body
LE: loop exit
PB: predicated region body
PF: predicated region fallthrough
CT: control target
= control target key end

     0   :  { %vm10_vm0 = vcmask 64512   ;;  %s128_s0 = inlined_call_operand.vmem [shape: f32[16,8], index: 0, kind: input, shape index: {}]   ;;  %s129_s1 = inlined_call_operand.vmem [shape: f32[16,8], index: 1, kind: output, shape index: {}]  }
   0x1   :  { %v8_v0 = vld [vmem:[%s128_s0] sm:$0xff]  ;;  %v9_v1 = vld [vmem:[%s128_s0 + $0x8] sm:$0xff] }
   0x2   :  { %v11_v2 = vsel %vm10_vm0, %v8_v0, 0.0  ;;  %v12_v3 = vsel %vm10_vm0, %v9_v1, 0.0 }
   0x3   :  { %v13_v4 = vadd.f32 %v12_v3, %v11_v2 }
   0x5   :  { %v14_v5 = vrot.slane %v13_v4, 4 }
   0x7   :  { %v15_v6 = vadd.f32 %v14_v5, %v13_v4 }
   0x9   :  { %v16_v7 = vrot.slane %v15_v6, 2 }
   0xb   :  { %v17_v8 = vadd.f32 %v16_v7, %v15_v6 }
   0xd   :  { %v18_v9 = vrot.slane %v17_v8, 1 }
   0xf   :  { %v19_v10 = vadd.f32 %v18_v9, %v17_v8 }
  0x11   :  { %v20_v11 = vmul.f32 0.0625, %v19_v10 }
  0x13   :  { %v21_v12 = vsub.f32 %v8_v0, %v20_v11  ;;  %v22_v13 = vsub.f32 %v9_v1, %v20_v11 }
  0x15   :  { %v23_v14 = vmul.f32 %v21_v12, %v21_v12  ;;  %v24_v15 = vmul.f32 %v22_v13, %v22_v13 }
  0x17   :  { %v25_v16 = vsel %vm10_vm0, %v23_v14, 0.0  ;;  %v26_v17 = vsel %vm10_vm0, %v24_v15, 0.0 }
  0x18   :  { %v27_v18 = vadd.f32 %v26_v17, %v25_v16 }
  0x1a   :  { %v28_v19 = vrot.slane %v27_v18, 4 }
  0x1c   :  { %v29_v20 = vadd.f32 %v28_v19, %v27_v18 }
  0x1e   :  { %v30_v21 = vrot.slane %v29_v20, 2 }
  0x20   :  { %v31_v22 = vadd.f32 %v30_v21, %v29_v20 }
  0x22   :  { %v32_v23 = vrot.slane %v31_v22, 1 }
  0x24   :  { %v33_v24 = vadd.f32 %v32_v23, %v31_v22 }
  0x26   :  { %v34_v25 = vmul.f32 0.0625, %v33_v24 }
  0x28   :  { %90 = vrsqrt.f32 %v34_v25  ;;  %vm37_vm1 = vcmp.eq.f32.partialorder %v34_v25, inf  ;;  %v40_v27 = vand.u32 2147483648, %v34_v25  ;;  %vm39_vm2 = vcmp.eq.f32.partialorder %v34_v25, 0.0 }
  0x32   :  { %v91_v26 = vpop.eup %90 }
  0x33   :  { %v36_v28 = vmul.f32 %v91_v26, %v34_v25 }
  0x35   :  { %v38_v29 = vsel %vm37_vm1, %v34_v25, %v36_v28 }
  0x36   :  { %v41_v30 = vsel %vm39_vm2, %v40_v27, %v38_v29 }
  0x37   :  { %v42_v31 = vmul.f32 4.0, %v41_v30 }
  0x39   :  { %v43_v32 = vsub.f32 0.0, %v42_v31 }
  0x3b   :  { %v44_v33 = vmax.f32 %v43_v32, %v21_v12  ;;  %v45_v34 = vmax.f32 %v43_v32, %v22_v13 }
  0x3d   :  { %v46_v35 = vmin.f32 %v42_v31, %v44_v33  ;;  %v47_v36 = vmin.f32 %v42_v31, %v45_v34 }
  0x3f   :  { %v48_v37 = vsel %vm10_vm0, %v46_v35, 0.0  ;;  %v49_v38 = vsel %vm10_vm0, %v47_v36, 0.0 }
  0x40   :  { %v50_v39 = vadd.f32 %v49_v38, %v48_v37 }
  0x42   :  { %v51_v40 = vrot.slane %v50_v39, 4 }
  0x44   :  { %v52_v41 = vadd.f32 %v51_v40, %v50_v39 }
  0x46   :  { %v53_v42 = vrot.slane %v52_v41, 2 }
  0x48   :  { %v54_v43 = vadd.f32 %v53_v42, %v52_v41 }
  0x4a   :  { %v55_v44 = vrot.slane %v54_v43, 1 }
  0x4c   :  { %v56_v45 = vadd.f32 %v55_v44, %v54_v43 }
  0x4e   :  { %v57_v46 = vmul.f32 0.0625, %v56_v45 }
  0x50   :  { %v58_v47 = vsub.f32 %v46_v35, %v57_v46  ;;  %v59_v48 = vsub.f32 %v47_v36, %v57_v46 }
  0x52   :  { %v60_v49 = vmul.f32 %v58_v47, %v58_v47  ;;  %v61_v50 = vmul.f32 %v59_v48, %v59_v48 }
  0x54   :  { %v62_v51 = vsel %vm10_vm0, %v60_v49, 0.0  ;;  %v63_v52 = vsel %vm10_vm0, %v61_v50, 0.0 }
  0x55   :  { %v64_v53 = vadd.f32 %v63_v52, %v62_v51 }
  0x57   :  { %v65_v54 = vrot.slane %v64_v53, 4 }
  0x59   :  { %v66_v55 = vadd.f32 %v65_v54, %v64_v53 }
  0x5b   :  { %v67_v56 = vrot.slane %v66_v55, 2 }
  0x5d   :  { %v68_v57 = vadd.f32 %v67_v56, %v66_v55 }
  0x5f   :  { %v69_v58 = vrot.slane %v68_v57, 1 }
  0x61   :  { %v70_v59 = vadd.f32 %v69_v58, %v68_v57 }
  0x63   :  { %v71_v60 = vmul.f32 0.0625, %v70_v59 }
  0x65   :  { %92 = vrsqrt.f32 %v71_v60  ;;  %vm74_vm3 = vcmp.eq.f32.partialorder %v71_v60, inf  ;;  %v77_v62 = vand.u32 2147483648, %v71_v60  ;;  %vm76_vm4 = vcmp.eq.f32.partialorder %v71_v60, 0.0 }
  0x6f   :  { %v93_v61 = vpop.eup %92 }
  0x70   :  { %v73_v63 = vmul.f32 %v93_v61, %v71_v60 }
  0x72   :  { %v75_v0 = vsel %vm74_vm3, %v71_v60, %v73_v63 }
  0x73   :  { %v78_v1 = vsel %vm76_vm4, %v77_v62, %v75_v0 }
  0x74   :  { %v79_v2 = vadd.f32 1e-06, %v78_v1 }
  0x76   :  { %94 = vrcp.f32 %v79_v2 }
  0x80   :  { %v95_v3 = vpop.eup %94 }
  0x81   :  { %v82_v4 = vmul.f32 %v95_v3, %v58_v47  ;;  %v83_v5 = vmul.f32 %v95_v3, %v59_v48 }
  0x83   :  { %84 = vst.msk [vmem:[%s129_s1] sm:$0xff] %vm10_vm0, %v82_v4  ;;  %85 = vst.msk [vmem:[%s129_s1 + $0x8] sm:$0xff] %vm10_vm0, %v83_v5 }

</bundles_post_ra>
